<compile_context>
chip_gen: v5e
topology: v5e:2x2
jax: 0.10.0
libtpu: 0.0.40
codegen_flags: <defaults>
</compile_context>

<pallas_src>
import functools

import jax
import jax.numpy as jnp
from jax.experimental import pallas as pl
from jax.experimental.pallas import tpu as pltpu

_LANE = 128
_MXU_PREF = 256  # full systolic-array tile on v6e / v7x


def _round_up(n: int, m: int) -> int:
    return ((n + m - 1) // m) * m


def _pick_tile(dim_p: int, pref: int = _MXU_PREF, lane: int = _LANE) -> int:
    """Largest of {256, 128} that divides the (already lane-padded) dim."""
    if dim_p % pref == 0:
        return pref
    if dim_p % lane == 0:
        return lane
    return dim_p  # dim_p is the full (unpadded-small) dimension


def _mean_linear_kernel(x_ref, w_ref, b_ref, o_ref, acc_ref):
    """One (tb, tn) output tile; K-reduction across grid axis 2 into f32 scratch."""
    k = pl.program_id(2)

    @pl.when(k == 0)
    def _():
        acc_ref[...] = jnp.zeros_like(acc_ref)

    # MXU matmul, f32 accumulation.
    acc_ref[...] += jnp.dot(
        x_ref[...], w_ref[...], preferred_element_type=jnp.float32
    )

    @pl.when(k == pl.num_programs(2) - 1)
    def _():
        # Mean-folded bias add in f32, single cast on the final lane-dense store.
        o_ref[...] = (acc_ref[...] + b_ref[...]).astype(o_ref.dtype)


def prepare_ensemble_params(weights, biases, *, compute_dtype=jnp.bfloat16):
    """One-time (load-time) preparation of the ensemble parameters.

    weights: [M, D_IN, D_OUT], biases: [M, D_OUT]
    Returns (w_mean_padded [D_IN_p, D_OUT_p] in compute_dtype,
             b_mean_padded [1, D_OUT_p] in f32,
             (d_in, d_out)).
    """
    _, d_in, d_out = weights.shape
    d_in_p = _round_up(d_in, _LANE)
    d_out_p = _round_up(d_out, _LANE)

    # Linearity of the mean over nn.Linear members: fold the ensemble into one
    # mean weight / mean bias.  M x fewer bytes and FLOPs in the kernel.
    w_mean = jnp.mean(weights.astype(jnp.float32), axis=0)
    b_mean = jnp.mean(biases.astype(jnp.float32), axis=0)

    w_p = jnp.pad(
        w_mean, ((0, d_in_p - d_in), (0, d_out_p - d_out))
    ).astype(compute_dtype)
    b_p = jnp.pad(b_mean, (0, d_out_p - d_out)).reshape(1, d_out_p).astype(
        jnp.float32
    )
    return w_p, b_p, (d_in, d_out)


def ensemble_forward(x, w_prepared, b_prepared, dims, *, compute_dtype=jnp.bfloat16):
    """x: [B, D_IN] -> [B, D_OUT], using prepared (mean-folded, padded) params."""
    d_in, d_out = dims
    d_in_p, d_out_p = w_prepared.shape
    B = x.shape[0]
    b_p = _round_up(max(B, 8), 8)  # sublane alignment for the LHS / output tiles

    # Per-call activation padding only (weights were prepared once at load time).
    x_p = jnp.pad(x, ((0, b_p - B), (0, d_in_p - d_in))).astype(compute_dtype)

    # Tile sizes: full-MXU 256 tiles on v6e/v7x when divisible, 128 otherwise.
    # Tiles are tiny relative to VMEM (bf16 256x256 weight tile = 128 KiB), so they
    # double-buffer comfortably even under v7x's 64 MiB physical VMEM.
    tk = _pick_tile(d_in_p)
    tn = _pick_tile(d_out_p)
    tb = b_p if (b_p <= 256 or b_p % 256 != 0) else 256

    grid = (b_p // tb, d_out_p // tn, d_in_p // tk)

    itemsize = jnp.dtype(compute_dtype).itemsize
    out_itemsize = jnp.dtype(x.dtype).itemsize
    bytes_accessed = (
        x_p.size * itemsize
        + w_prepared.size * itemsize
        + b_prepared.size * 4
        + b_p * d_out_p * out_itemsize
    )

    out_p = pl.pallas_call(
        _mean_linear_kernel,
        out_shape=jax.ShapeDtypeStruct((b_p, d_out_p), x.dtype),
        grid_spec=pltpu.PrefetchScalarGridSpec(
            num_scalar_prefetch=0,
            grid=grid,
            in_specs=[
                pl.BlockSpec((tb, tk), lambda i, j, k: (i, k)),   # activations
                pl.BlockSpec((tk, tn), lambda i, j, k: (k, j)),   # mean weights
                pl.BlockSpec((1, tn), lambda i, j, k: (0, j)),    # mean bias
            ],
            out_specs=pl.BlockSpec((tb, tn), lambda i, j, k: (i, j)),
            scratch_shapes=[pltpu.VMEM((tb, tn), jnp.float32)],
        ),
        compiler_params=pltpu.CompilerParams(
            # B / N shard across v7x's two TensorCores; K (reduction, last) stays
            # sequential so the accumulator carry is valid.
            dimension_semantics=("parallel", "parallel", "arbitrary"),
        ),
        cost_estimate=pl.CostEstimate(
            flops=2 * b_p * d_in_p * d_out_p,
            transcendentals=0,
            bytes_accessed=bytes_accessed,
        ),
    )(x_p, w_prepared, b_prepared)

    # Strip padding (cheap XLA slice outside the kernel).
    return out_p[:B, :d_out]


if __name__ == "__main__":
    # Small, deterministic shapes: 3 ensemble members, batch=8, 32 -> 32 features.
    M, B, D_IN, D_OUT = 3, 8, 32, 32

    key = jax.random.PRNGKey(0)
    kx, kw, kb = jax.random.split(key, 3)

    x = jax.random.normal(kx, (B, D_IN), dtype=jnp.float32)
    weights = jax.random.normal(kw, (M, D_IN, D_OUT), dtype=jnp.float32) * 0.1
    biases = jax.random.normal(kb, (M, D_OUT), dtype=jnp.float32) * 0.1

    # Load-time preparation (mean-fold + pad + bf16 cast), then the hot forward.
    w_prep, b_prep, dims = prepare_ensemble_params(weights, biases)
    out = ensemble_forward(x, w_prep, b_prep, dims)
    out = jax.block_until_ready(out)

    # Reference 1 (tight): same bf16-rounded operands the kernel streams, f32 accum.
    xb = x.astype(jnp.bfloat16).astype(jnp.float32)
    wmb = (
        jnp.mean(weights, axis=0).astype(jnp.bfloat16).astype(jnp.float32)
    )
    ref_tight = xb @ wmb + jnp.mean(biases, axis=0)[None, :]

    # Reference 2 (loose): exact f32 PyTorch-style ensemble mean.
    ref_full = jnp.mean(
        jnp.einsum("bi,mio->mbo", x, weights) + biases[:, None, :], axis=0
    )

    assert out.shape == (B, D_OUT)
    assert jnp.allclose(out, ref_tight, atol=1e-3, rtol=1e-3), float(
        jnp.max(jnp.abs(out - ref_tight))
    )
    assert jnp.allclose(out, ref_full, atol=3e-2, rtol=3e-2), float(
        jnp.max(jnp.abs(out - ref_full))
    )

    print("KERNEL_OK")
</pallas_src>

<mosaic_0001>
module attributes {stable_mosaic.version = 11 : i64} {
  func.func @_mean_linear_kernel(%arg0: i32, %arg1: i32, %arg2: i32, %arg3: memref<8x128xbf16, #tpu.memory_space<vmem>>, %arg4: memref<128x128xbf16, #tpu.memory_space<vmem>>, %arg5: memref<1x128xf32, #tpu.memory_space<vmem>>, %arg6: memref<8x128xf32, #tpu.memory_space<vmem>>, %arg7: memref<8x128xf32, #tpu.memory_space<vmem>>) attributes {dimension_semantics = [#tpu.dimension_semantics<parallel>, #tpu.dimension_semantics<parallel>, #tpu.dimension_semantics<arbitrary>], iteration_bounds = array<i64: 1, 1, 1>, scalar_prefetch = 0 : i64, scratch_operands = 1 : i64, tpu.core_type = #tpu.core_type<tc>, window_params = [{transform_indices = @transform_0, window_bounds = array<i64: 8, 128>}, {transform_indices = @transform_1, window_bounds = array<i64: 128, 128>}, {transform_indices = @transform_2, window_bounds = array<i64: 1, 128>}, {transform_indices = @transform_3, window_bounds = array<i64: 8, 128>}]} {
    %c0_i32 = arith.constant 0 : i32
    %0 = arith.cmpi eq, %arg2, %c0_i32 : i32
    %1 = arith.extui %0 : i1 to i32
    %c0_i32_0 = arith.constant 0 : i32
    %2 = arith.cmpi ne, %1, %c0_i32_0 : i32
    scf.if %2 {
      %cst_10 = arith.constant 0.000000e+00 : f32
      %12 = vector.broadcast %cst_10 : f32 to vector<8x128xf32>
      %c0_11 = arith.constant 0 : index
      %c0_12 = arith.constant 0 : index
      %13 = vector.load %arg7[%c0_11, %c0_12] : memref<8x128xf32, #tpu.memory_space<vmem>>, vector<8x128xf32>
      tpu.vector_store %arg7[%c0_11, %c0_12], %12 {strides = array<i32>} : memref<8x128xf32, #tpu.memory_space<vmem>>, vector<8x128xf32>,
    } else {
    }
    %c0 = arith.constant 0 : index
    %c0_1 = arith.constant 0 : index
    %3 = vector.load %arg7[%c0, %c0_1] : memref<8x128xf32, #tpu.memory_space<vmem>>, vector<8x128xf32>
    %c0_2 = arith.constant 0 : index
    %c0_3 = arith.constant 0 : index
    %4 = vector.load %arg3[%c0_2, %c0_3] : memref<8x128xbf16, #tpu.memory_space<vmem>>, vector<8x128xbf16>
    %c0_4 = arith.constant 0 : index
    %c0_5 = arith.constant 0 : index
    %5 = vector.load %arg4[%c0_4, %c0_5] : memref<128x128xbf16, #tpu.memory_space<vmem>>, vector<128x128xbf16>
    %cst = arith.constant dense<0.000000e+00> : vector<8x128xf32>
    %6 = tpu.matmul %4, %5, %cst {dimension_numbers = #tpu.dot_dimension_numbers<[1], [0], [0], [1], [0, 0, 1, 1], [], []>} : vector<8x128xbf16>, vector<128x128xbf16>, vector<8x128xf32> -> vector<8x128xf32>
    %7 = arith.addf %3, %6 : vector<8x128xf32>
    %c0_6 = arith.constant 0 : index
    %c0_7 = arith.constant 0 : index
    %8 = vector.load %arg7[%c0_6, %c0_7] : memref<8x128xf32, #tpu.memory_space<vmem>>, vector<8x128xf32>
    tpu.vector_store %arg7[%c0_6, %c0_7], %7 {strides = array<i32>} : memref<8x128xf32, #tpu.memory_space<vmem>>, vector<8x128xf32>,
    %c0_i32_8 = arith.constant 0 : i32
    %9 = arith.cmpi eq, %arg2, %c0_i32_8 : i32
    %10 = arith.extui %9 : i1 to i32
    %c0_i32_9 = arith.constant 0 : i32
    %11 = arith.cmpi ne, %10, %c0_i32_9 : i32
    scf.if %11 {
      %c0_10 = arith.constant 0 : index
      %c0_11 = arith.constant 0 : index
      %12 = vector.load %arg7[%c0_10, %c0_11] : memref<8x128xf32, #tpu.memory_space<vmem>>, vector<8x128xf32>
      %c0_12 = arith.constant 0 : index
      %c0_13 = arith.constant 0 : index
      %13 = vector.load %arg5[%c0_12, %c0_13] : memref<1x128xf32, #tpu.memory_space<vmem>>, vector<1x128xf32>
      %14 = vector.broadcast %13 : vector<1x128xf32> to vector<8x128xf32>
      %15 = arith.addf %12, %14 : vector<8x128xf32>
      %c0_14 = arith.constant 0 : index
      %c0_15 = arith.constant 0 : index
      %16 = vector.load %arg6[%c0_14, %c0_15] : memref<8x128xf32, #tpu.memory_space<vmem>>, vector<8x128xf32>
      tpu.vector_store %arg6[%c0_14, %c0_15], %15 {strides = array<i32>} : memref<8x128xf32, #tpu.memory_space<vmem>>, vector<8x128xf32>,
    } else {
    }
    return
  }
  func.func @transform_0(%arg0: i32, %arg1: i32, %arg2: i32) -> (i32, i32) {
    %c0_i32 = arith.constant 0 : i32
    return %arg0, %arg2 : i32, i32
  }
  func.func @transform_1(%arg0: i32, %arg1: i32, %arg2: i32) -> (i32, i32) {
    %c0_i32 = arith.constant 0 : i32
    return %arg2, %arg1 : i32, i32
  }
  func.func @transform_2(%arg0: i32, %arg1: i32, %arg2: i32) -> (i32, i32) {
    %c0_i32 = arith.constant 0 : i32
    %c0_i32_0 = arith.constant 0 : i32
    return %c0_i32, %arg1 : i32, i32
  }
  func.func @transform_3(%arg0: i32, %arg1: i32, %arg2: i32) -> (i32, i32) {
    %c0_i32 = arith.constant 0 : i32
    return %arg0, %arg1 : i32, i32
  }
}

</mosaic_0001>

<bundles_post_ra>
// kernel: tpu_custom_call.1
= control target key start
LH: loop header
LB: loop body
LE: loop exit
PB: predicated region body
PF: predicated region fallthrough
CT: control target
= control target key end

     0   :  { %8 = vsyncpa [#allocation4], 0  ;;  %s320_s0 = inlined_call_operand.hbm [shape: bf16[8,128], index: 0, kind: input, shape index: {}]   ;;  %s321_s1 = inlined_call_operand.hbm [shape: bf16[128,128], index: 1, kind: input, shape index: {}]   ;;  %s322_s2 = inlined_call_operand.vmem [shape: f32[1,128], index: 2, kind: input, shape index: {}]   ;;  %s323_s3 = inlined_call_operand.hbm [shape: f32[8,128], index: 3, kind: output, shape index: {}]  }
   0x1   :  { %9 = vsyncpa [#allocation7], 0 }
   0x2   :  { %10 = vsyncpa [#allocation5], 0  ;;  %s16_s14 = sshll.u32 %s320_s0, 4  ;;  %s283_s15 = smov [#allocation3]   ;;  %s17_s14 = int_to_ptr.hbm [resolvable:$true] %s16_s14 }
   0x3   :  { %s18_s16 = sshll.u32 %s283_s15, 4  ;;  %s26_s19 = sshll.u32 %s321_s1, 4  ;;  %s19_s16 = int_to_ptr.vmem [resolvable:$true] %s18_s16  ;;  %s27_s19 = int_to_ptr.hbm [resolvable:$true] %s26_s19 }
   0x4   :  { %21 = dma.hbm_to_vmem [thread:$0]  %s17_s14, 64, %s19_s16, [#allocation4]  }
   0x5   :  { %s284_s20 = smov [#allocation6]   ;;  %s285_s22 = smov 64  }
   0x6   :  { %s28_s21 = sshll.u32 %s284_s20, 4  ;;  %s286_s23 = smov 4   ;;  %s29_s21 = int_to_ptr.vmem [resolvable:$true] %s28_s21 }
   0x7   :  { %34 = dma.hbm_to_vmem [thread:$0]  %s27_s19, 1024, %s29_s21, [#allocation7], %s285_s22, %s285_s22, %s286_s23  }
   0x8   :  { %277 = dma.done.wait [#allocation4], 64  }
   0x9   :  { %278 = vsyncadd [#allocation4], 4294967232 }
   0xa   :  { %279 = dma.done.wait [#allocation7], 1024  }
   0xb   :  { %280 = vsyncadd [#allocation7], 4294966272  ;;  %v198_v0 = vld [vmem:[#allocation6 + $0x38] sm:$0xff]  ;;  %v197_v1 = vld [vmem:[#allocation6 + $0x30] sm:$0xff]  ;;  %s287_s24 = smov [#allocation8]   ;;  %s148_s28 = sshll.u32 %s323_s3, 4  ;;  %s149_s28 = int_to_ptr.hbm [resolvable:$true] %s148_s28 }
   0xc   :  { %116 = vmatpush.bf16.msra.mxu0 %v198_v0  ;;  %v196_v2 = vld [vmem:[#allocation6 + $0x28] sm:$0xff]  ;;  %v195_v3 = vld [vmem:[#allocation6 + $0x20] sm:$0xff]  ;;  %v194_v4 = vld [vmem:[#allocation6 + $0x18] sm:$0xff]  ;;  %s146_s25 = sshll.u32 %s287_s24, 4  ;;  %s147_s25 = int_to_ptr.vmem [resolvable:$true] %s146_s25 }
   0xd   :  { %v193_v5 = vld [vmem:[#allocation6 + $0x10] sm:$0xff]  ;;  %v192_v6 = vld [vmem:[#allocation6 + $0x8] sm:$0xff]  ;;  %v191_v7 = vld [vmem:[#allocation6] sm:$0xff] }
   0xe   :  { %v51_v8 = vld [vmem:[#allocation3] sm:$0xf] }
   0xf   :  { %v204_v9 = vld [vmem:[%s322_s2] ss:$0 sm:$0xff] }
  0x10   :  { %117 = vmatpush.bf16.msra.mxu0 %v197_v1 }
  0x14   :  { %118 = vmatpush.bf16.msra.mxu0 %v196_v2 }
  0x18   :  { %119 = vmatpush.bf16.msra.mxu0 %v195_v3 }
  0x1c   :  { %120 = vmatpush.bf16.msra.mxu0 %v194_v4 }
  0x20   :  { %121 = vmatpush.bf16.msra.mxu0 %v193_v5 }
  0x24   :  { %122 = vmatpush.bf16.msra.mxu0 %v192_v6 }
  0x28   :  { %123 = vmatpush.bf16.msra.mxu0 %v191_v7 }
  0x2b   :  { %124 = vmatmul.bf16.vlgmr.msra.gmra.mxu0 %v51_v8 }
  0xa8   :  { %v125_v10 = vpop.f32.mrf.mxu0 }
  0xa9   :  { %v139_v11 = vadd.f32 %v204_v9, %v125_v10 }
  0xab   :  { %140 = vst [vmem:[#allocation8] sm:$0xff] %v139_v11 }
  0xac   :  { %151 = dma.vmem_to_hbm [thread:$0]  %s147_s25, 128, %s149_s28, [#allocation5]  }
  0xb0   :  { %v127_v12 = vpop.f32.mrf.mxu0 }
  0xb1   :  { %281 = dma.done.wait [#allocation5], 128  }
  0xb2   :  { %282 = vsyncadd [#allocation5], 4294967168 }
  0xb3   :  { %156 = vsyncpa [#allocation4], 1 }
  0xb4   :  { %157 = vsyncpa [#allocation7], 1 }
  0xb5   :  { %158 = vsyncpa [#allocation5], 1 }

</bundles_post_ra>
